<compile_context>
chip_gen: v7x
topology: tpu7x:2x2x1
jax: 0.10.0
libtpu: 0.0.40
codegen_flags: <defaults>
</compile_context>

<pallas_src>
import jax
import jax.numpy as jnp
import numpy as np
from jax.experimental import pallas as pl
from jax.experimental.pallas import tpu as pltpu

_EPS = 1e-7


def _std_mean_kernel(x_ref, o_ref):
    # (TILE_R, N) tile in VMEM; reduce along the lane (last) axis.
    x = x_ref[...].astype(jnp.float32)
    n = x.shape[-1]
    mean = jnp.sum(x, axis=-1, keepdims=True) * (1.0 / n)
    d = x - mean
    # torch.std default is unbiased (Bessel's correction, divide by N-1).
    var = jnp.sum(d * d, axis=-1, keepdims=True) * (1.0 / (n - 1))
    std = jnp.sqrt(var) + _EPS
    # One reciprocal per row on the EUP; per-element work is a VPU multiply.
    inv_std = pl.reciprocal(std, approx=True)
    o_ref[...] = (d * inv_std).astype(o_ref.dtype)


def _min_max_kernel(x_ref, o_ref):
    x = x_ref[...].astype(jnp.float32)
    mn = jnp.min(x, axis=-1, keepdims=True)
    mx = jnp.max(x, axis=-1, keepdims=True)
    inv = pl.reciprocal((mx - mn) + _EPS, approx=True)
    o_ref[...] = ((x - mn) * inv).astype(o_ref.dtype)


def _pick_tile_rows(rows, n, itemsize):
    """Largest row tile (multiple of 8) that keeps in+out double-buffers
    comfortably under the smallest scoped-VMEM default (16 MiB on v5e),
    capped at the empirical 1024-row sweet spot."""
    budget = 8 * 1024 * 1024            # leave plenty of headroom everywhere
    per_row = 4 * n * itemsize          # 2 arrays (in+out) x 2 buffers each
    tile_r = max(8, (budget // max(per_row, 1)) // 8 * 8)
    tile_r = min(tile_r, 1024)
    if tile_r >= rows:
        return rows                      # full-extent block is always legal
    return int(tile_r)


def _run_2d(x2d, kernel, tile_rows=None):
    rows, n = x2d.shape
    if tile_rows is None:
        tile_rows = _pick_tile_rows(rows, n, x2d.dtype.itemsize)
    tile_rows = min(tile_rows, rows)
    grid = (pl.cdiv(rows, tile_rows),)
    return pl.pallas_call(
        kernel,
        out_shape=jax.ShapeDtypeStruct((rows, n), x2d.dtype),
        grid=grid,
        in_specs=[pl.BlockSpec((tile_rows, n), lambda i: (i, 0))],
        out_specs=pl.BlockSpec((tile_rows, n), lambda i: (i, 0)),
        compiler_params=pltpu.CompilerParams(
            dimension_semantics=("parallel",)),
    )(x2d)


def gotcha_normalize(x, method="std_mean", tile_rows=None):
    """JAX/Pallas equivalent of GotchaNormalize.forward."""
    if method == "std_mean":
        kernel = _std_mean_kernel
    elif method == "min_max":
        kernel = _min_max_kernel
    else:
        raise ValueError(f"unsupported method: {method}")

    if x.ndim == 1:
        # TODO(synk): for very large hot 1-D inputs, an (8, N/8) lane-dense
        # reshape with a full 2-D reduction would use all sublanes; the (1, N)
        # view is kept for simplicity since the 1-D path is not hot here.
        y = _run_2d(x.reshape(1, -1), kernel, tile_rows=tile_rows)
        return y.reshape(-1)
    elif x.ndim == 2:
        return _run_2d(x, kernel, tile_rows=tile_rows)
    # PyTorch forward only handles ndim 1/2 for these methods; pass through.
    return x


# ---------------------------- pure-JAX references ----------------------------

def _ref_std_mean(x):
    axis = -1 if x.ndim == 2 else None
    mean = jnp.mean(x, axis=axis, keepdims=x.ndim == 2)
    std = jnp.std(x, axis=axis, keepdims=x.ndim == 2, ddof=1) + _EPS
    return (x - mean) / std


def _ref_min_max(x):
    axis = -1 if x.ndim == 2 else None
    mn = jnp.min(x, axis=axis, keepdims=x.ndim == 2)
    mx = jnp.max(x, axis=axis, keepdims=x.ndim == 2)
    return (x - mn) / (mx - mn + _EPS)


if __name__ == "__main__":
    key = jax.random.PRNGKey(0)
    k1, k2 = jax.random.split(key)
    # Small, deterministic shapes: 32 doppler vectors of 128 bins + one 1-D case.
    x2d = jax.random.normal(k1, (32, 128), dtype=jnp.float32) * 3.0 + 1.5
    x1d = jax.random.normal(k2, (128,), dtype=jnp.float32) * 2.0 - 0.7

    # Default (auto tile) path — single tile at this small size.
    y2_std = gotcha_normalize(x2d, method="std_mean")
    y2_mm = gotcha_normalize(x2d, method="min_max")
    # Force the multi-tile pipelined path (grid of 4) to exercise row tiling.
    y2_std_t = gotcha_normalize(x2d, method="std_mean", tile_rows=8)
    y2_mm_t = gotcha_normalize(x2d, method="min_max", tile_rows=8)
    # 1-D path.
    y1_std = gotcha_normalize(x1d, method="std_mean")
    y1_mm = gotcha_normalize(x1d, method="min_max")
    jax.block_until_ready((y2_std, y2_mm, y2_std_t, y2_mm_t, y1_std, y1_mm))

    # Slightly relaxed tolerance: approx (EUP) reciprocal vs. exact divide.
    tol = dict(rtol=5e-3, atol=5e-3)
    np.testing.assert_allclose(np.asarray(y2_std), np.asarray(_ref_std_mean(x2d)), **tol)
    np.testing.assert_allclose(np.asarray(y2_mm), np.asarray(_ref_min_max(x2d)), **tol)
    np.testing.assert_allclose(np.asarray(y2_std_t), np.asarray(_ref_std_mean(x2d)), **tol)
    np.testing.assert_allclose(np.asarray(y2_mm_t), np.asarray(_ref_min_max(x2d)), **tol)
    np.testing.assert_allclose(np.asarray(y1_std), np.asarray(_ref_std_mean(x1d)), **tol)
    np.testing.assert_allclose(np.asarray(y1_mm), np.asarray(_ref_min_max(x1d)), **tol)

    print("KERNEL_OK")
</pallas_src>

<mosaic_0001>
module attributes {stable_mosaic.version = 11 : i64} {
  func.func @_std_mean_kernel(%arg0: i32, %arg1: memref<32x128xf32, #tpu.memory_space<vmem>>, %arg2: memref<32x128xf32, #tpu.memory_space<vmem>>) attributes {dimension_semantics = [#tpu.dimension_semantics<parallel>], iteration_bounds = array<i64: 1>, scalar_prefetch = 0 : i64, scratch_operands = 0 : i64, tpu.core_type = #tpu.core_type<tc>, window_params = [{transform_indices = @transform_0, window_bounds = array<i64: 32, 128>}, {transform_indices = @transform_1, window_bounds = array<i64: 32, 128>}]} {
    %c0 = arith.constant 0 : index
    %c0_0 = arith.constant 0 : index
    %0 = vector.load %arg1[%c0, %c0_0] : memref<32x128xf32, #tpu.memory_space<vmem>>, vector<32x128xf32>
    %cst = arith.constant dense<0.000000e+00> : vector<32xf32>
    %1 = vector.multi_reduction <add>, %0, %cst [1] : vector<32x128xf32> to vector<32xf32>
    %2 = vector.shape_cast %1 : vector<32xf32> to vector<32x1xf32>
    %cst_1 = arith.constant 7.812500e-03 : f32
    %3 = vector.broadcast %cst_1 : f32 to vector<32x1xf32>
    %4 = arith.mulf %2, %3 : vector<32x1xf32>
    %5 = vector.broadcast %4 : vector<32x1xf32> to vector<32x128xf32>
    %6 = arith.subf %0, %5 : vector<32x128xf32>
    %7 = arith.mulf %6, %6 : vector<32x128xf32>
    %cst_2 = arith.constant dense<0.000000e+00> : vector<32xf32>
    %8 = vector.multi_reduction <add>, %7, %cst_2 [1] : vector<32x128xf32> to vector<32xf32>
    %9 = vector.shape_cast %8 : vector<32xf32> to vector<32x1xf32>
    %cst_3 = arith.constant 0.00787401571 : f32
    %10 = vector.broadcast %cst_3 : f32 to vector<32x1xf32>
    %11 = arith.mulf %9, %10 : vector<32x1xf32>
    %12 = math.sqrt %11 : vector<32x1xf32>
    %cst_4 = arith.constant 1.000000e-07 : f32
    %13 = vector.broadcast %cst_4 : f32 to vector<32x1xf32>
    %14 = arith.addf %12, %13 : vector<32x1xf32>
    %15 = tpu.reciprocal %14 {approx = true} : vector<32x1xf32> -> vector<32x1xf32>
    %16 = vector.broadcast %15 : vector<32x1xf32> to vector<32x128xf32>
    %17 = arith.mulf %6, %16 : vector<32x128xf32>
    %c0_5 = arith.constant 0 : index
    %c0_6 = arith.constant 0 : index
    %18 = vector.load %arg2[%c0_5, %c0_6] : memref<32x128xf32, #tpu.memory_space<vmem>>, vector<32x128xf32>
    tpu.vector_store %arg2[%c0_5, %c0_6], %17 {strides = array<i32>} : memref<32x128xf32, #tpu.memory_space<vmem>>, vector<32x128xf32>,
    return
  }
  func.func @transform_0(%arg0: i32) -> (i32, i32) {
    %c0_i32 = arith.constant 0 : i32
    %c0_i32_0 = arith.constant 0 : i32
    return %arg0, %c0_i32 : i32, i32
  }
  func.func @transform_1(%arg0: i32) -> (i32, i32) {
    %c0_i32 = arith.constant 0 : i32
    %c0_i32_0 = arith.constant 0 : i32
    return %arg0, %c0_i32 : i32, i32
  }
}

</mosaic_0001>

<bundles_post_ra>
// kernel: tpu_custom_call.1
= control target key start
LH: loop header
LB: loop body
LE: loop exit
PB: predicated region body
PF: predicated region fallthrough
CT: control target
= control target key end

     0   :  { %6 = vsyncpa [#allocation3], 0  ;;  %s247_s0 = inlined_call_operand.hbm [shape: f32[32,128], index: 0, kind: input, shape index: {}]   ;;  %s248_s1 = inlined_call_operand.hbm [shape: f32[32,128], index: 1, kind: output, shape index: {}]  }
   0x1   :  { %7 = vsyncpa [#allocation4], 0  ;;  %s188_s6 = smov [#allocation2]   ;;  %s140_s10 = scalar_lea.hbm %s247_s0, 512 }
   0x2   :  { %s13_s7 = sshll.u32 %s188_s6, 4  ;;  %p141_p0 = scmp.ne.s32.totalorder %s247_s0, %s140_s10  ;;  %s14_s7 = int_to_ptr.vmem [resolvable:$true] %s13_s7 }
   0x3   :  { %p144_p1 = scmp.lt.u32.totalorder %s140_s10, %s247_s0 }
   0x5   :  { %p146_p2 = pnand %p144_p1, %p141_p0 }
   0x7   :  { %149 = shalt.err (!%p146_p2)
}
   0x8   :  { %s150_s15 = scalar_lea.vmem %s14_s7, 512  ;;  %p155_p4 = scmp.lt.s32.totalorder %s14_s7, %s14_s7 }
   0x9   :  { %p151_p3 = scmp.ne.s32.totalorder %s14_s7, %s150_s15  ;;  %p156_p5 = scmp.lt.s32.totalorder %s150_s15, %s150_s15 }
   0xb   :  { %p157_p6 = por %p156_p5, %p155_p4 }
   0xd   :  { %p158_p7 = pnand %p157_p6, %p151_p3 }
   0xf   :  { %161 = shalt.err (!%p158_p7)
}
  0x10   :  { %s189_s16 = smov 128   ;;  %s190_s17 = smov 8  }
  0x11   :  { %19 = dma.hbm_to_vmem [thread:$0]  %s247_s0, 512, %s14_s7, [#allocation3], %s189_s16, %s189_s16, %s190_s17  }
  0x12   :  { %184 = dma.done.wait [#allocation3], 512  }
  0x13   :  { %185 = vsyncadd [#allocation3], 4294966784  ;;  %v23_v0 = vld [vmem:[#allocation2] sm:$0xff]  ;;  %v25_v1 = vld [vmem:[#allocation2 + $0x10] sm:$0xff]  ;;  %s191_s0 = smov [#allocation5]  }
  0x14   :  { %27 = vadd.xlane.f32.xlu0 %v23_v0  ;;  %31 = vadd.xlane.f32.xlu1 %v25_v1  ;;  %v24_v2 = vld [vmem:[#allocation2 + $0x8] sm:$0xff]  ;;  %v26_v3 = vld [vmem:[#allocation2 + $0x18] sm:$0xff]  ;;  %s108_s20 = sshll.u32 %s191_s0, 4  ;;  %s109_s20 = int_to_ptr.vmem [resolvable:$true] %s108_s20 }
  0x15   :  { %s162_s21 = scalar_lea.vmem %s109_s20, 512  ;;  %p167_p9 = scmp.lt.s32.totalorder %s109_s20, %s109_s20 }
  0x16   :  { %p163_p8 = scmp.ne.s32.totalorder %s109_s20, %s162_s21  ;;  %p168_p10 = scmp.lt.s32.totalorder %s162_s21, %s162_s21 }
  0x18   :  { %29 = vadd.xlane.f32.xlu0 %v24_v2  ;;  %33 = vadd.xlane.f32.xlu1 %v26_v3  ;;  %p169_p11 = por %p168_p10, %p167_p9 }
  0x1a   :  { %p170_p12 = pnand %p169_p11, %p163_p8 }
  0xa1   :  { %v28_v4 = vpop.xlane.xlu0 %27  ;;  %v32_v5 = vpop.xlane.xlu1 %31 }
  0xa2   :  { %v35_v6 = vmul.f32 0.0078125, %v28_v4  ;;  %v37_v7 = vmul.f32 0.0078125, %v32_v5 }
  0xa4   :  { %v217_v8 = vsub.f32 %v23_v0, %v35_v6  ;;  %v219_v9 = vsub.f32 %v25_v1, %v37_v7 }
  0xa5   :  { %v30_v10 = vpop.xlane.xlu0 %29  ;;  %v34_v11 = vpop.xlane.xlu1 %33 }
  0xa6   :  { %v36_v12 = vmul.f32 0.0078125, %v30_v10  ;;  %v43_v13 = vmul.f32 %v217_v8, %v217_v8  ;;  %v38_v14 = vmul.f32 0.0078125, %v34_v11  ;;  %v45_v17 = vmul.f32 %v219_v9, %v219_v9 }
  0xa8   :  { %v40_v15 = vsub.f32 %v24_v2, %v36_v12  ;;  %47 = vadd.xlane.f32.xlu0 %v43_v13  ;;  %v223_v16 = vsub.f32 %v26_v3, %v38_v14 }
  0xaa   :  { %v44_v18 = vmul.f32 %v40_v15, %v40_v15  ;;  %v46_v19 = vmul.f32 %v223_v16, %v223_v16 }
  0xac   :  { %51 = vadd.xlane.f32.xlu0 %v45_v17  ;;  %49 = vadd.xlane.f32.xlu1 %v44_v18 }
  0xb0   :  { %53 = vadd.xlane.f32.xlu1 %v46_v19 }
 0x135   :  { %v48_v20 = vpop.xlane.xlu0 %47 }
 0x136   :  { %v55_v21 = vmul.f32 0.007874016, %v48_v20 }
 0x138   :  { %124 = vrsqrt.f32 %v55_v21  ;;  %vm61_vm0 = vcmp.eq.f32.partialorder %v55_v21, inf  ;;  %v64_v30 = vand.u32 2147483648, %v55_v21  ;;  %vm63_vm1 = vcmp.eq.f32.partialorder %v55_v21, 0.0 }
 0x139   :  { %v50_v22 = vpop.xlane.xlu1 %49  ;;  %v52_v23 = vpop.xlane.xlu0 %51 }
 0x13a   :  { %v56_v24 = vmul.f32 0.007874016, %v50_v22  ;;  %v57_v25 = vmul.f32 0.007874016, %v52_v23 }
 0x13c   :  { %126 = vrsqrt.f32 %v56_v24  ;;  %vm68_vm2 = vcmp.eq.f32.partialorder %v56_v24, inf  ;;  %vm70_vm3 = vcmp.eq.f32.partialorder %v56_v24, 0.0  ;;  %v71_v37 = vand.u32 2147483648, %v56_v24 }
 0x13d   :  { %128 = vrsqrt.f32 %v57_v25  ;;  %v54_v26 = vpop.xlane.xlu1 %53  ;;  %vm75_vm4 = vcmp.eq.f32.partialorder %v57_v25, inf  ;;  %v78_v40 = vand.u32 2147483648, %v57_v25  ;;  %vm77_vm5 = vcmp.eq.f32.partialorder %v57_v25, 0.0 }
 0x13e   :  { %v58_v27 = vmul.f32 0.007874016, %v54_v26 }
 0x140   :  { %130 = vrsqrt.f32 %v58_v27  ;;  %vm82_vm6 = vcmp.eq.f32.partialorder %v58_v27, inf  ;;  %v85_v48 = vand.u32 2147483648, %v58_v27  ;;  %vm84_vm7 = vcmp.eq.f32.partialorder %v58_v27, 0.0 }
 0x142   :  { %v125_v28 = vpop.eup %124 }
 0x143   :  { %v60_v29 = vmul.f32 %v125_v28, %v55_v21 }
 0x145   :  { %v62_v31 = vsel %vm61_vm0, %v55_v21, %v60_v29 }
 0x146   :  { %v127_v32 = vpop.eup %126  ;;  %v65_v33 = vsel %vm63_vm1, %v64_v30, %v62_v31 }
 0x147   :  { %v129_v34 = vpop.eup %128  ;;  %v87_v35 = vadd.f32 1e-07, %v65_v33  ;;  %v67_v36 = vmul.f32 %v127_v32, %v56_v24 }
 0x148   :  { %v74_v38 = vmul.f32 %v129_v34, %v57_v25 }
 0x149   :  { %v69_v39 = vsel %vm68_vm2, %v56_v24, %v67_v36  ;;  %132 = vrcp.f32 %v87_v35 }
 0x14a   :  { %v131_v41 = vpop.eup %130  ;;  %v72_v42 = vsel %vm70_vm3, %v71_v37, %v69_v39  ;;  %v76_v43 = vsel %vm75_vm4, %v57_v25, %v74_v38 }
 0x14b   :  { %v88_v44 = vadd.f32 1e-07, %v72_v42  ;;  %v79_v45 = vsel %vm77_vm5, %v78_v40, %v76_v43  ;;  %v81_v46 = vmul.f32 %v131_v41, %v58_v27 }
 0x14c   :  { %v89_v47 = vadd.f32 1e-07, %v79_v45 }
 0x14d   :  { %v83_v49 = vsel %vm82_vm6, %v58_v27, %v81_v46  ;;  %134 = vrcp.f32 %v88_v44 }
 0x14e   :  { %136 = vrcp.f32 %v89_v47  ;;  %v86_v50 = vsel %vm84_vm7, %v85_v48, %v83_v49 }
 0x14f   :  { %v90_v51 = vadd.f32 1e-07, %v86_v50 }
 0x151   :  { %138 = vrcp.f32 %v90_v51 }
 0x153   :  { %v133_v52 = vpop.eup %132 }
 0x154   :  { %v95_v53 = vmul.f32 %v133_v52, %v217_v8 }
 0x156   :  { %99 = vst [vmem:[#allocation5] sm:$0xff] %v95_v53 }
 0x157   :  { %v135_v54 = vpop.eup %134 }
 0x158   :  { %v137_v55 = vpop.eup %136  ;;  %v96_v56 = vmul.f32 %v135_v54, %v40_v15 }
 0x159   :  { %v97_v57 = vmul.f32 %v137_v55, %v219_v9 }
 0x15a   :  { %100 = vst [vmem:[#allocation5 + $0x8] sm:$0xff] %v96_v56 }
 0x15b   :  { %v139_v58 = vpop.eup %138  ;;  %101 = vst [vmem:[#allocation5 + $0x10] sm:$0xff] %v97_v57 }
 0x15c   :  { %v98_v59 = vmul.f32 %v139_v58, %v223_v16 }
 0x15e   :  { %102 = vst [vmem:[#allocation5 + $0x18] sm:$0xff] %v98_v59 }
 0x15f   :  { %173 = shalt.err (!%p170_p12)
}
 0x160   :  { %s174_s24 = scalar_lea.hbm %s248_s1, 512 }
 0x161   :  { %p175_p13 = scmp.ne.s32.totalorder %s248_s1, %s174_s24  ;;  %p178_p0 = scmp.lt.u32.totalorder %s174_s24, %s248_s1 }
 0x163   :  { %p180_p1 = pnand %p178_p0, %p175_p13 }
 0x165   :  { %183 = shalt.err (!%p180_p1)
}
 0x166   :  { %114 = dma.vmem_to_hbm [thread:$0]  %s109_s20, 512, %s248_s1, [#allocation4], %s189_s16, %s189_s16, %s190_s17  }
 0x167   :  { %186 = dma.done.wait [#allocation4], 512  }
 0x168   :  { %187 = vsyncadd [#allocation4], 4294966784 }
 0x169   :  { %118 = vsyncpa [#allocation3], 1 }
 0x16a   :  { %119 = vsyncpa [#allocation4], 1 }

</bundles_post_ra>
